<compile_context>
chip_gen: v7x
topology: tpu7x:2x2x1
jax: 0.10.0
libtpu: 0.0.40
codegen_flags: <defaults>
</compile_context>

<pallas_src>
import jax
import jax.numpy as jnp
from jax.experimental import pallas as pl
from jax.experimental.pallas import tpu as pltpu


# ---------------------------------------------------------------------------
# Kernel
# ---------------------------------------------------------------------------
def _span_repr_kernel(enc_ref, repr_ref):
    """Batch-blocked forward pass for `repr`.

    enc_ref : (BB, T,   2H)  VMEM tile of encoded_emb
    repr_ref: (BB, T-1, 2H)  output: cat(x_f[:, :-1], x_b[:, 1:], -1)
    """
    _, t, two_h = enc_ref.shape
    h = two_h // 2

    if h % 128 == 0:
        # Both halves are lane-aligned multiples of 128 -> two unmasked,
        # full-lane stores (no masked RMW, no lane movement).
        repr_ref[:, :, 0:h] = enc_ref[:, 0:t - 1, 0:h]
        repr_ref[:, :, h:two_h] = enc_ref[:, 1:t, h:two_h]
    else:
        # Sub-128 halves would lower to masked vst.msk read-modify-write.
        # Instead build the full-width row with a lane-iota select (VALU is
        # idle in this copy kernel) and issue ONE unmasked full-2H store.
        lane = jax.lax.broadcasted_iota(jnp.int32, (1, 1, two_h), 2)
        fwd = enc_ref[:, 0:t - 1, :]   # forward half lives in lanes [0, h)
        bwd = enc_ref[:, 1:t, :]       # backward half lives in lanes [h, 2h)
        repr_ref[:, :, :] = jnp.where(lane < h, fwd, bwd)


# ---------------------------------------------------------------------------
# Tiling heuristics
# ---------------------------------------------------------------------------
def _vmem_capacity_bytes():
    try:
        return int(pltpu.get_tpu_info().vmem_capacity_bytes)
    except Exception:
        return 64 << 20  # conservative (v7x per-TC VMEM)


def _choose_batch_block(B, T, two_h, dtype):
    """Pick a batch block targeting ~4 MiB input tiles, VMEM-budget aware.

    Returns (bb, vmem_limit_bytes, fits) — fits=False means even bb=1 would
    not fit the budget and the caller should fall back to pure JAX.
    """
    itemsize = jnp.dtype(dtype).itemsize
    per_batch_in = T * two_h * itemsize
    per_batch_out = (T - 1) * two_h * itemsize
    per_batch_resident = 2 * (per_batch_in + per_batch_out)  # double-buffered in+out

    vmem_cap = _vmem_capacity_bytes()
    budget = vmem_cap * 3 // 4  # leave headroom for compiler scratch etc.

    if per_batch_resident > budget:
        return 1, budget, False

    target_in_tile = 4 << 20  # ~4 MiB input tile: measured roofline sweet spot
    bb_from_target = max(1, target_in_tile // max(per_batch_in, 1))
    bb_from_budget = max(1, budget // max(per_batch_resident, 1))
    bb = int(min(B, bb_from_target, bb_from_budget))

    # v7x megacore split: only worth it if the halved tile stays >= ~1 MiB
    # (otherwise we just double the ~0.35 us per-step overhead).
    if B >= 2 and pl.cdiv(B, bb) < 2:
        half_bb = pl.cdiv(B, 2)
        if half_bb * per_batch_in >= (1 << 20):
            bb = int(half_bb)

    need = bb * per_batch_resident + (2 << 20)
    vmem_limit = int(min(max(need, 32 << 20), max(vmem_cap * 7 // 8, need)))
    return bb, vmem_limit, True


# ---------------------------------------------------------------------------
# Wrapper (== SpanSelection.forward hot path, given encoded_emb)
# ---------------------------------------------------------------------------
def span_selection_forward(encoded_emb, batch_block=None):
    """Pallas implementation of SpanSelection.forward given `encoded_emb`.

    Args:
      encoded_emb: [B, T, 2H] float array (BiLSTM encoder output).
      batch_block: optional override of the batch tile size (testing).

    Returns:
      (repr, hx, word_repr) matching the PyTorch module:
        repr      : [B, T-1, 2H]
        hx        : None
        word_repr : [B, T-2, 2H]   (plain slice of the input; left to XLA)
    """
    B, T, two_h = encoded_emb.shape
    assert T >= 3, "need at least 3 timesteps"
    assert two_h % 2 == 0, "feature dim must be 2 * hidden"

    bb, vmem_limit, fits = _choose_batch_block(B, T, two_h, encoded_emb.dtype)
    if batch_block is not None:
        bb = int(min(batch_block, B))

    # word_repr is a verbatim slice of the input: no kernel traffic needed.
    word_repr = encoded_emb[:, 1:-1]

    if not fits:
        # TODO(synk): T-blocked (halo'd) kernel for sequences too large for
        # VMEM; pure-JAX fallback keeps correctness for such shapes.
        h = two_h // 2
        repr_out = jnp.concatenate(
            [encoded_emb[:, :-1, :h], encoded_emb[:, 1:, h:]], axis=-1)
        return repr_out, None, word_repr

    grid = (pl.cdiv(B, bb),)
    repr_shape = jax.ShapeDtypeStruct((B, T - 1, two_h), encoded_emb.dtype)

    repr_out = pl.pallas_call(
        _span_repr_kernel,
        out_shape=repr_shape,
        grid_spec=pltpu.PrefetchScalarGridSpec(
            num_scalar_prefetch=0,
            grid=grid,
            in_specs=[
                pl.BlockSpec((bb, T, two_h), lambda b: (b, 0, 0)),
            ],
            out_specs=pl.BlockSpec((bb, T - 1, two_h), lambda b: (b, 0, 0)),
        ),
        compiler_params=pltpu.CompilerParams(
            dimension_semantics=("parallel",),
            vmem_limit_bytes=vmem_limit,
        ),
    )(encoded_emb)

    hx = None
    return repr_out, hx, word_repr


# ---------------------------------------------------------------------------
# Pure-JAX reference
# ---------------------------------------------------------------------------
def _reference_forward(encoded_emb):
    two_h = encoded_emb.shape[-1]
    h = two_h // 2
    x_f = encoded_emb[..., :h]
    x_b = encoded_emb[..., h:]
    repr_ = jnp.concatenate([x_f[:, :-1], x_b[:, 1:]], axis=-1)
    word_repr = encoded_emb[:, 1:-1]
    return repr_, None, word_repr


if __name__ == "__main__":
    key = jax.random.PRNGKey(0)

    # --- main test: batch=2, seq(T)=8, n_lstm_hidden=64 -> encoded_emb [2, 8, 128]
    # (H=64 is NOT a multiple of 128 -> exercises the single lane-dense store path)
    B, T, H = 2, 8, 64
    encoded_emb = jax.random.normal(key, (B, T, 2 * H), dtype=jnp.float32)

    repr_out, hx, word_repr = span_selection_forward(encoded_emb)
    jax.block_until_ready(repr_out)
    jax.block_until_ready(word_repr)

    ref_repr, _, ref_word = _reference_forward(encoded_emb)
    assert repr_out.shape == (B, T - 1, 2 * H)
    assert word_repr.shape == (B, T - 2, 2 * H)
    assert hx is None
    assert jnp.allclose(repr_out, ref_repr)
    assert jnp.allclose(word_repr, ref_word)

    # --- secondary test: odd batch + partial final block + aligned (H=128) path
    B2, T2, H2 = 3, 5, 128
    key2 = jax.random.PRNGKey(1)
    enc2 = jax.random.normal(key2, (B2, T2, 2 * H2), dtype=jnp.float32)
    r2, _, w2 = span_selection_forward(enc2, batch_block=2)  # forces a partial block
    jax.block_until_ready(r2)
    ref_r2, _, ref_w2 = _reference_forward(enc2)
    assert jnp.allclose(r2, ref_r2)
    assert jnp.allclose(w2, ref_w2)

    print("KERNEL_OK")
</pallas_src>

<mosaic_0001>
module attributes {stable_mosaic.version = 11 : i64} {
  func.func @_span_repr_kernel(%arg0: i32, %arg1: memref<2x8x128xf32, #tpu.memory_space<vmem>>, %arg2: memref<2x7x128xf32, #tpu.memory_space<vmem>>) attributes {dimension_semantics = [#tpu.dimension_semantics<parallel>], iteration_bounds = array<i64: 1>, scalar_prefetch = 0 : i64, scratch_operands = 0 : i64, tpu.core_type = #tpu.core_type<tc>, window_params = [{transform_indices = @transform_0, window_bounds = array<i64: 2, 8, 128>}, {transform_indices = @transform_1, window_bounds = array<i64: 2, 7, 128>}]} {
    %0 = tpu.iota {dimensions = array<i32: 2>} : vector<1x1x128xi32>
    %c0 = arith.constant 0 : index
    %c0_0 = arith.constant 0 : index
    %c0_1 = arith.constant 0 : index
    %1 = vector.load %arg1[%c0, %c0_0, %c0_1] : memref<2x8x128xf32, #tpu.memory_space<vmem>>, vector<2x7x128xf32>
    %c0_2 = arith.constant 0 : index
    %c1 = arith.constant 1 : index
    %c0_3 = arith.constant 0 : index
    %2 = vector.load %arg1[%c0_2, %c1, %c0_3] : memref<2x8x128xf32, #tpu.memory_space<vmem>>, vector<2x7x128xf32>
    %c64_i32 = arith.constant 64 : i32
    %3 = vector.broadcast %c64_i32 : i32 to vector<1x1x128xi32>
    %4 = arith.cmpi slt, %0, %3 : vector<1x1x128xi32>
    %5 = vector.shape_cast %4 : vector<1x1x128xi1> to vector<1x1x128xi1>
    %6 = vector.broadcast %5 : vector<1x1x128xi1> to vector<2x7x128xi1>
    %7 = arith.select %6, %1, %2 : vector<2x7x128xi1>, vector<2x7x128xf32>
    %c0_4 = arith.constant 0 : index
    %c0_5 = arith.constant 0 : index
    %c0_6 = arith.constant 0 : index
    %8 = vector.load %arg2[%c0_4, %c0_5, %c0_6] : memref<2x7x128xf32, #tpu.memory_space<vmem>>, vector<2x7x128xf32>
    tpu.vector_store %arg2[%c0_4, %c0_5, %c0_6], %7 {strides = array<i32>} : memref<2x7x128xf32, #tpu.memory_space<vmem>>, vector<2x7x128xf32>,
    return
  }
  func.func @transform_0(%arg0: i32) -> (i32, i32, i32) {
    %c0_i32 = arith.constant 0 : i32
    %c0_i32_0 = arith.constant 0 : i32
    %c0_i32_1 = arith.constant 0 : i32
    return %arg0, %c0_i32, %c0_i32_0 : i32, i32, i32
  }
  func.func @transform_1(%arg0: i32) -> (i32, i32, i32) {
    %c0_i32 = arith.constant 0 : i32
    %c0_i32_0 = arith.constant 0 : i32
    %c0_i32_1 = arith.constant 0 : i32
    return %arg0, %c0_i32, %c0_i32_0 : i32, i32, i32
  }
}

</mosaic_0001>

<bundles_post_ra>
// kernel: tpu_custom_call.1
= control target key start
LH: loop header
LB: loop body
LE: loop exit
PB: predicated region body
PF: predicated region fallthrough
CT: control target
= control target key end

     0   :  { %6 = vsyncpa [#allocation3], 0  ;;  %s67_s6 = smov [#allocation2]   ;;  %s98_s0 = inlined_call_operand.hbm [shape: f32[2,8,128], index: 0, kind: input, shape index: {}]   ;;  %s99_s1 = inlined_call_operand.vmem [shape: f32[2,7,128], index: 1, kind: output, shape index: {}]  }
   0x1   :  { %s12_s7 = sshll.u32 %s67_s6, 4  ;;  %s43_s10 = scalar_lea.hbm %s98_s0, 256  ;;  %s13_s7 = int_to_ptr.vmem [resolvable:$true] %s12_s7 }
   0x2   :  { %p44_p0 = scmp.ne.s32.totalorder %s98_s0, %s43_s10  ;;  %p47_p1 = scmp.lt.u32.totalorder %s43_s10, %s98_s0 }
   0x4   :  { %p49_p2 = pnand %p47_p1, %p44_p0 }
   0x6   :  { %52 = shalt.err (!%p49_p2)
}
   0x7   :  { %s53_s15 = scalar_lea.vmem %s13_s7, 256  ;;  %p58_p4 = scmp.lt.s32.totalorder %s13_s7, %s13_s7 }
   0x8   :  { %p54_p3 = scmp.ne.s32.totalorder %s13_s7, %s53_s15  ;;  %p59_p5 = scmp.lt.s32.totalorder %s53_s15, %s53_s15 }
   0xa   :  { %p60_p6 = por %p59_p5, %p58_p4 }
   0xc   :  { %p61_p7 = pnand %p60_p6, %p54_p3 }
   0xe   :  { %64 = shalt.err (!%p61_p7)
}
   0xf   :  { %s68_s16 = smov 128   ;;  %s69_s17 = smov 8  }
  0x10   :  { %18 = dma.hbm_to_vmem [thread:$0]  %s98_s0, 256, %s13_s7, [#allocation3], %s68_s16, %s68_s16, %s69_s17  }
  0x11   :  { %65 = dma.done.wait [#allocation3], 256  }
  0x12   :  { %66 = vsyncadd [#allocation3], 4294967040  ;;  %v22_v0 = vlaneseq  ;;  %v24_v2 = vld [vmem:[#allocation2] sm:$0x7f]  ;;  %v25_v4 = vld [vmem:[#allocation2 + $0x8] sm:$0x7f] }
  0x13   :  { %v26_v3 = vld [vmem:[#allocation2 + $0x1] sm:$0x7f]  ;;  %v27_v6 = vld [vmem:[#allocation2 + $0x9] sm:$0x7f] }
  0x14   :  { %v23_v1 = vand.u32 127, %v22_v0 }
  0x16   :  { %vm28_vm0 = vcmp.lt.s32.totalorder %v23_v1, 64 }
  0x17   :  { %v31_v5 = vsel %vm28_vm0, %v24_v2, %v26_v3  ;;  %v32_v7 = vsel %vm28_vm0, %v25_v4, %v27_v6 }
  0x18   :  { %33 = vst [vmem:[%s99_s1] sm:$0x7f] %v31_v5  ;;  %34 = vst [vmem:[%s99_s1 + $0x8] sm:$0x7f] %v32_v7 }
  0x19   :  { %39 = vsyncpa [#allocation3], 1 }

</bundles_post_ra>
